<compile_context>
chip_gen: v5e
topology: v5e:2x2
jax: 0.10.0
libtpu: 0.0.40
codegen_flags: <defaults>
</compile_context>

<pallas_src>
import functools

import jax
import jax.numpy as jnp
from jax import lax
from jax.experimental import pallas as pl
from jax.experimental.pallas import tpu as pltpu


def _conv_bias_relu_kernel(x_ref, w_ref, b_ref, o_ref, xpad_ref, *,
                           BB, H, W, Cin, Cout, K, pad, apply_relu):
    # x_ref:    (BB, H, W*Cin)        lane-dense activations (one batch block)
    # w_ref:    (K, W*Cin, W*Cout)    banded weights (kw taps + W padding folded in)
    # b_ref:    (1, W*Cout)           bias tiled along W (lane-dense layout)
    # o_ref:    (BB, H, W*Cout)       lane-dense output block
    # xpad_ref: (BB, H+2p, W*Cin)     VMEM scratch, zero-padded along H only

    # Halo rows are never overwritten by the interior copy and the scratch
    # persists across grid steps -> zero the scratch only once.
    @pl.when(pl.program_id(0) == 0)
    def _():
        xpad_ref[...] = jnp.zeros_like(xpad_ref)

    # Interior copy (H padding only; W padding is inside the banded weights).
    xpad_ref[:, pl.ds(pad, H), :] = x_ref[...]

    # out[b, h, w'*Cout+co] = sum_kh xpad[b, h+kh, :] @ Wband[kh][:, w'*Cout+co]
    # K shifted row-matmuls accumulated in f32 on the MXU.
    acc = None
    for kh in range(K):                                   # static unroll (K=3)
        rows = xpad_ref[:, pl.ds(kh, H), :].reshape(BB * H, W * Cin)
        part = jnp.dot(rows, w_ref[kh], preferred_element_type=jnp.float32)
        acc = part if acc is None else acc + part

    acc = acc + b_ref[...]                                # (BB*H, W*Cout) + (1, W*Cout)
    if apply_relu:
        acc = jnp.maximum(acc, 0.0)
    o_ref[...] = acc.reshape(BB, H, W * Cout).astype(o_ref.dtype)


def _largest_divisor_at_most(n, cap):
    d = min(n, cap)
    while n % d:
        d -= 1
    return d


def conv_relu_pallas(x_nchw, weight, bias, *, relu=True, batch_block=None):
    """x_nchw: (B, Cin, H, W); weight: (Cout, Cin, K, K); bias: (Cout,)."""
    B, Cin, H, W = x_nchw.shape
    Cout, Cin_w, K, K2 = weight.shape
    assert Cin == Cin_w and K == K2
    # padding=(K-1)//2 matches PyTorch 'same'-style pad only for odd K, stride=1
    assert K % 2 == 1, "only odd kernel sizes supported (stride=1)"
    pad = (K - 1) // 2

    if batch_block is None:
        batch_block = _largest_divisor_at_most(B, 8)      # fold batch into M
    BB = batch_block
    assert B % BB == 0

    # NCHW -> lane-dense (B, H, W*Cin).
    # TODO(synk): keep the surrounding model NHWC end-to-end so this transpose
    #             (and the one on the way out) is not an extra HBM pass at
    #             production sizes.
    x_dense = jnp.transpose(x_nchw, (0, 2, 3, 1)).reshape(B, H, W * Cin)

    # Banded weights:
    #   Wband[kh, w*Cin+ci, w'*Cout+co] = weight[co, ci, kh, w - w' + pad]
    # (zero outside the band), which folds the kw loop, the Cin->Cout mixing and
    # the zero padding along W into one MXU contraction per kh.
    wt = jnp.transpose(weight, (2, 3, 1, 0))              # (K, K, Cin, Cout)
    w_in = jnp.arange(W)[:, None]
    w_out = jnp.arange(W)[None, :]
    kw = w_in - w_out + pad                               # (W, W)
    valid = (kw >= 0) & (kw < K)
    band = wt[:, jnp.clip(kw, 0, K - 1)]                  # (K, W, W, Cin, Cout)
    band = band * valid[None, :, :, None, None].astype(wt.dtype)
    w_band = band.transpose(0, 1, 3, 2, 4).reshape(K, W * Cin, W * Cout)

    # Bias tiled along W so the add happens directly in the (.., W*Cout) layout.
    b_tiled = jnp.tile(bias, W).reshape(1, W * Cout)

    kernel = functools.partial(
        _conv_bias_relu_kernel,
        BB=BB, H=H, W=W, Cin=Cin, Cout=Cout, K=K, pad=pad, apply_relu=relu)

    out = pl.pallas_call(
        kernel,
        out_shape=jax.ShapeDtypeStruct((B, H, W * Cout), x_nchw.dtype),
        grid_spec=pltpu.PrefetchScalarGridSpec(
            num_scalar_prefetch=0,
            grid=(B // BB,),
            in_specs=[
                pl.BlockSpec((BB, H, W * Cin), lambda i: (i, 0, 0)),
                # weights / bias resident across all grid steps
                pl.BlockSpec((K, W * Cin, W * Cout), lambda i: (0, 0, 0)),
                pl.BlockSpec((1, W * Cout), lambda i: (0, 0)),
            ],
            out_specs=pl.BlockSpec((BB, H, W * Cout), lambda i: (i, 0, 0)),
            scratch_shapes=[pltpu.VMEM((BB, H + 2 * pad, W * Cin), x_nchw.dtype)],
        ),
        compiler_params=pltpu.CompilerParams(
            dimension_semantics=("parallel",)),
    )(x_dense, w_band, b_tiled)

    # (B, H, W*Cout) -> (B, H, W, Cout) -> NCHW to match the PyTorch boundary.
    return jnp.transpose(out.reshape(B, H, W, Cout), (0, 3, 1, 2))


if __name__ == "__main__":
    # Module config mirroring Conv(inp_dim=4, out_dim=8) defaults:
    # kernel_size=3, stride=1, padding=1, bias=True, bn=False, relu=True
    B, Cin, Cout, H, W, K = 2, 4, 8, 16, 16, 3

    key = jax.random.PRNGKey(0)
    kx, kwgt, kb = jax.random.split(key, 3)
    x = jax.random.normal(kx, (B, Cin, H, W), dtype=jnp.float32)
    # deterministic synthetic params (PyTorch-style small uniform init)
    fan_in = Cin * K * K
    bound = 1.0 / (fan_in ** 0.5)
    weight = jax.random.uniform(kwgt, (Cout, Cin, K, K), minval=-bound,
                                maxval=bound, dtype=jnp.float32)
    bias = jax.random.uniform(kb, (Cout,), minval=-bound, maxval=bound,
                              dtype=jnp.float32)

    out = conv_relu_pallas(x, weight, bias)
    out = jax.block_until_ready(out)

    # sanity check vs XLA conv reference
    ref = lax.conv_general_dilated(
        x, weight, window_strides=(1, 1), padding=((1, 1), (1, 1)),
        dimension_numbers=("NCHW", "OIHW", "NCHW"))
    ref = jnp.maximum(ref + bias.reshape(1, Cout, 1, 1), 0.0)
    assert out.shape == (B, Cout, H, W)
    assert jnp.allclose(out, ref, atol=1e-4, rtol=1e-4)

    print("KERNEL_OK")
</pallas_src>

<mosaic_0001>
module attributes {stable_mosaic.version = 11 : i64} {
  func.func @_conv_bias_relu_kernel(%arg0: i32, %arg1: memref<2x16x64xf32, #tpu.memory_space<vmem>>, %arg2: memref<3x64x128xf32, #tpu.memory_space<vmem>>, %arg3: memref<1x128xf32, #tpu.memory_space<vmem>>, %arg4: memref<2x16x128xf32, #tpu.memory_space<vmem>>, %arg5: memref<2x18x64xf32, #tpu.memory_space<vmem>>) attributes {dimension_semantics = [#tpu.dimension_semantics<parallel>], iteration_bounds = array<i64: 1>, scalar_prefetch = 0 : i64, scratch_operands = 1 : i64, tpu.core_type = #tpu.core_type<tc>, window_params = [{transform_indices = @transform_0, window_bounds = array<i64: 2, 16, 64>}, {pipeline_mode = #tpu.pipeline_mode<synchronous>, transform_indices = @transform_1, window_bounds = array<i64: 3, 64, 128>}, {pipeline_mode = #tpu.pipeline_mode<synchronous>, transform_indices = @transform_2, window_bounds = array<i64: 1, 128>}, {transform_indices = @transform_3, window_bounds = array<i64: 2, 16, 128>}]} {
    %c0_i32 = arith.constant 0 : i32
    %0 = arith.cmpi eq, %arg0, %c0_i32 : i32
    %1 = arith.extui %0 : i1 to i32
    %c0_i32_0 = arith.constant 0 : i32
    %2 = arith.cmpi ne, %1, %c0_i32_0 : i32
    scf.if %2 {
      %cst_30 = arith.constant 0.000000e+00 : f32
      %29 = vector.broadcast %cst_30 : f32 to vector<2x18x64xf32>
      %c0_31 = arith.constant 0 : index
      %c0_32 = arith.constant 0 : index
      %c0_33 = arith.constant 0 : index
      %30 = vector.load %arg5[%c0_31, %c0_32, %c0_33] : memref<2x18x64xf32, #tpu.memory_space<vmem>>, vector<2x18x64xf32>
      tpu.vector_store %arg5[%c0_31, %c0_32, %c0_33], %29 {strides = array<i32>} : memref<2x18x64xf32, #tpu.memory_space<vmem>>, vector<2x18x64xf32>,
    } else {
    }
    %c0 = arith.constant 0 : index
    %c0_1 = arith.constant 0 : index
    %c0_2 = arith.constant 0 : index
    %3 = vector.load %arg1[%c0, %c0_1, %c0_2] : memref<2x16x64xf32, #tpu.memory_space<vmem>>, vector<2x16x64xf32>
    %c0_3 = arith.constant 0 : index
    %c1 = arith.constant 1 : index
    %c0_4 = arith.constant 0 : index
    %4 = vector.load %arg5[%c0_3, %c1, %c0_4] : memref<2x18x64xf32, #tpu.memory_space<vmem>>, vector<2x16x64xf32>
    tpu.vector_store %arg5[%c0_3, %c1, %c0_4], %3 {strides = array<i32>} : memref<2x18x64xf32, #tpu.memory_space<vmem>>, vector<2x16x64xf32>,
    %c0_5 = arith.constant 0 : index
    %c0_6 = arith.constant 0 : index
    %c0_7 = arith.constant 0 : index
    %5 = vector.load %arg5[%c0_5, %c0_6, %c0_7] : memref<2x18x64xf32, #tpu.memory_space<vmem>>, vector<2x16x64xf32>
    %6 = vector.shape_cast %5 : vector<2x16x64xf32> to vector<32x64xf32>
    %c0_8 = arith.constant 0 : index
    %c0_9 = arith.constant 0 : index
    %c0_10 = arith.constant 0 : index
    %7 = vector.load %arg2[%c0_8, %c0_9, %c0_10] : memref<3x64x128xf32, #tpu.memory_space<vmem>>, vector<1x64x128xf32>
    %8 = vector.shape_cast %7 : vector<1x64x128xf32> to vector<64x128xf32>
    %cst = arith.constant dense<0.000000e+00> : vector<32x128xf32>
    %9 = tpu.matmul %6, %8, %cst {dimension_numbers = #tpu.dot_dimension_numbers<[1], [0], [0], [1], [0, 0, 1, 1], [], []>} : vector<32x64xf32>, vector<64x128xf32>, vector<32x128xf32> -> vector<32x128xf32>
    %c0_11 = arith.constant 0 : index
    %c1_12 = arith.constant 1 : index
    %c0_13 = arith.constant 0 : index
    %10 = vector.load %arg5[%c0_11, %c1_12, %c0_13] : memref<2x18x64xf32, #tpu.memory_space<vmem>>, vector<2x16x64xf32>
    %11 = vector.shape_cast %10 : vector<2x16x64xf32> to vector<32x64xf32>
    %c1_14 = arith.constant 1 : index
    %c0_15 = arith.constant 0 : index
    %c0_16 = arith.constant 0 : index
    %12 = vector.load %arg2[%c1_14, %c0_15, %c0_16] : memref<3x64x128xf32, #tpu.memory_space<vmem>>, vector<1x64x128xf32>
    %13 = vector.shape_cast %12 : vector<1x64x128xf32> to vector<64x128xf32>
    %cst_17 = arith.constant dense<0.000000e+00> : vector<32x128xf32>
    %14 = tpu.matmul %11, %13, %cst_17 {dimension_numbers = #tpu.dot_dimension_numbers<[1], [0], [0], [1], [0, 0, 1, 1], [], []>} : vector<32x64xf32>, vector<64x128xf32>, vector<32x128xf32> -> vector<32x128xf32>
    %15 = arith.addf %9, %14 : vector<32x128xf32>
    %c0_18 = arith.constant 0 : index
    %c2 = arith.constant 2 : index
    %c0_19 = arith.constant 0 : index
    %16 = vector.load %arg5[%c0_18, %c2, %c0_19] : memref<2x18x64xf32, #tpu.memory_space<vmem>>, vector<2x16x64xf32>
    %17 = vector.shape_cast %16 : vector<2x16x64xf32> to vector<32x64xf32>
    %c2_20 = arith.constant 2 : index
    %c0_21 = arith.constant 0 : index
    %c0_22 = arith.constant 0 : index
    %18 = vector.load %arg2[%c2_20, %c0_21, %c0_22] : memref<3x64x128xf32, #tpu.memory_space<vmem>>, vector<1x64x128xf32>
    %19 = vector.shape_cast %18 : vector<1x64x128xf32> to vector<64x128xf32>
    %cst_23 = arith.constant dense<0.000000e+00> : vector<32x128xf32>
    %20 = tpu.matmul %17, %19, %cst_23 {dimension_numbers = #tpu.dot_dimension_numbers<[1], [0], [0], [1], [0, 0, 1, 1], [], []>} : vector<32x64xf32>, vector<64x128xf32>, vector<32x128xf32> -> vector<32x128xf32>
    %21 = arith.addf %15, %20 : vector<32x128xf32>
    %c0_24 = arith.constant 0 : index
    %c0_25 = arith.constant 0 : index
    %22 = vector.load %arg3[%c0_24, %c0_25] : memref<1x128xf32, #tpu.memory_space<vmem>>, vector<1x128xf32>
    %23 = vector.broadcast %22 : vector<1x128xf32> to vector<32x128xf32>
    %24 = arith.addf %21, %23 : vector<32x128xf32>
    %cst_26 = arith.constant 0.000000e+00 : f32
    %25 = vector.broadcast %cst_26 : f32 to vector<32x128xf32>
    %26 = arith.maximumf %24, %25 : vector<32x128xf32>
    %27 = vector.shape_cast %26 : vector<32x128xf32> to vector<2x16x128xf32>
    %c0_27 = arith.constant 0 : index
    %c0_28 = arith.constant 0 : index
    %c0_29 = arith.constant 0 : index
    %28 = vector.load %arg4[%c0_27, %c0_28, %c0_29] : memref<2x16x128xf32, #tpu.memory_space<vmem>>, vector<2x16x128xf32>
    tpu.vector_store %arg4[%c0_27, %c0_28, %c0_29], %27 {strides = array<i32>} : memref<2x16x128xf32, #tpu.memory_space<vmem>>, vector<2x16x128xf32>,
    return
  }
  func.func @transform_0(%arg0: i32) -> (i32, i32, i32) {
    %c0_i32 = arith.constant 0 : i32
    %c0_i32_0 = arith.constant 0 : i32
    %c0_i32_1 = arith.constant 0 : i32
    return %arg0, %c0_i32, %c0_i32_0 : i32, i32, i32
  }
  func.func @transform_1(%arg0: i32) -> (i32, i32, i32) {
    %c0_i32 = arith.constant 0 : i32
    %c0_i32_0 = arith.constant 0 : i32
    %c0_i32_1 = arith.constant 0 : i32
    %c0_i32_2 = arith.constant 0 : i32
    return %c0_i32, %c0_i32_0, %c0_i32_1 : i32, i32, i32
  }
  func.func @transform_2(%arg0: i32) -> (i32, i32) {
    %c0_i32 = arith.constant 0 : i32
    %c0_i32_0 = arith.constant 0 : i32
    %c0_i32_1 = arith.constant 0 : i32
    return %c0_i32, %c0_i32_0 : i32, i32
  }
  func.func @transform_3(%arg0: i32) -> (i32, i32, i32) {
    %c0_i32 = arith.constant 0 : i32
    %c0_i32_0 = arith.constant 0 : i32
    %c0_i32_1 = arith.constant 0 : i32
    return %arg0, %c0_i32, %c0_i32_0 : i32, i32, i32
  }
}

</mosaic_0001>

<bundles_post_ra>
// kernel: tpu_custom_call.1
= control target key start
LH: loop header
LB: loop body
LE: loop exit
PB: predicated region body
PF: predicated region fallthrough
CT: control target
= control target key end

     0   :  { %8 = vsyncpa [#allocation4], 0  ;;  %s441_s0 = inlined_call_operand.hbm [shape: f32[2,16,64], index: 0, kind: input, shape index: {}]   ;;  %s442_s1 = inlined_call_operand.hbm [shape: f32[3,64,128], index: 1, kind: input, shape index: {}]   ;;  %s443_s2 = inlined_call_operand.vmem [shape: f32[1,128], index: 2, kind: input, shape index: {}]   ;;  %s444_s3 = inlined_call_operand.hbm [shape: f32[2,16,128], index: 3, kind: output, shape index: {}]  }
   0x1   :  { %9 = vsyncpa [#allocation7], 0 }
   0x2   :  { %10 = vsyncpa [#allocation5], 0  ;;  %s15_s14 = sshll.u32 %s441_s0, 4  ;;  %s374_s15 = smov [#allocation3]   ;;  %s16_s14 = int_to_ptr.hbm [resolvable:$true] %s15_s14 }
   0x3   :  { %s17_s16 = sshll.u32 %s374_s15, 4  ;;  %s28_s19 = sshll.u32 %s442_s1, 4  ;;  %s18_s16 = int_to_ptr.vmem [resolvable:$true] %s17_s16  ;;  %s29_s19 = int_to_ptr.hbm [resolvable:$true] %s28_s19 }
   0x4   :  { %s375_s20 = smov 128   ;;  %s376_s21 = smov 8  }
   0x5   :  { %23 = dma.hbm_to_vmem [thread:$0]  %s16_s14, 512, %s18_s16, [#allocation4], %s375_s20, %s375_s20, %s376_s21  }
   0x6   :  { %s377_s22 = smov [#allocation6]  }
   0x7   :  { %s30_s23 = sshll.u32 %s377_s22, 4  ;;  %s31_s23 = int_to_ptr.vmem [resolvable:$true] %s30_s23 }
   0x8   :  { %36 = dma.hbm_to_vmem [thread:$0]  %s29_s19, 3072, %s31_s23, [#allocation7], %s375_s20, %s375_s20, %s376_s21  }
   0x9   :  { %368 = dma.done.wait [#allocation4], 512  }
   0xa   :  { %369 = vsyncadd [#allocation4], 4294966784 }
   0xb   :  { %370 = dma.done.wait [#allocation7], 3072  }
   0xc   :  { %371 = vsyncadd [#allocation7], 4294964224  ;;  %vm51_vm0 = vcmask 523264   ;;  %vm54_vm1 = vcmask 517120   ;;  %v378_v0 = vmov 0.0   ;;  %v187_v1 = vld [vmem:[#allocation6 + $0xb8] sm:$0xff] }
   0xd   :  { %52 = vst.msk [vmem:[#allocation2] sm:$0xff] %vm51_vm0, %v378_v0  ;;  %v186_v2 = vld [vmem:[#allocation6 + $0xb0] sm:$0xff]  ;;  %v92_v3 = vld [vmem:[#allocation6 + $0x78] sm:$0xff]  ;;  %208 = vmatpush.msra.mxu2 %v187_v1  ;;  %v185_v6 = vld [vmem:[#allocation6 + $0xa8] sm:$0xff]  ;;  %s255_s27 = sshll.u32 %s444_s3, 4  ;;  %s256_s27 = int_to_ptr.hbm [resolvable:$true] %s255_s27 }
   0xe   :  { %53 = vst.msk [vmem:[#allocation2 + $0x8] sm:$0xff] %vm51_vm0, %v378_v0  ;;  %113 = vmatpush.msra.mxu0 %v92_v3  ;;  %v79_v4 = vld [vmem:[#allocation6 + $0x38] sm:$0xff]  ;;  %v91_v5 = vld [vmem:[#allocation6 + $0x70] sm:$0xff]  ;;  %281 = vmatpush.msra.mxu3 %v92_v3  ;;  %v90_v8 = vld [vmem:[#allocation6 + $0x68] sm:$0xff] }
   0xf   :  { %55 = vst.msk [vmem:[#allocation2 + $0x10] sm:$0x3] %vm54_vm1, %v378_v0  ;;  %154 = vmatpush.msra.mxu1 %v79_v4  ;;  %v78_v7 = vld [vmem:[#allocation6 + $0x30] sm:$0xff]  ;;  %209 = vmatpush.msra.mxu2 %v186_v2  ;;  %v77_v9 = vld [vmem:[#allocation6 + $0x28] sm:$0xff]  ;;  %v184_v10 = vld [vmem:[#allocation6 + $0xa0] sm:$0xff] }
  0x10   :  { %56 = vst.msk [vmem:[#allocation2 + $0x18] sm:$0xff] %vm51_vm0, %v378_v0  ;;  %114 = vmatpush.msra.mxu0 %v91_v5  ;;  %282 = vmatpush.msra.mxu3 %v91_v5  ;;  %v89_v11 = vld [vmem:[#allocation6 + $0x60] sm:$0xff]  ;;  %v183_v13 = vld [vmem:[#allocation6 + $0x98] sm:$0xff]  ;;  %v60_v17 = vld [vmem:[#allocation3 + $0x8] sm:$0xff] }
  0x11   :  { %57 = vst.msk [vmem:[#allocation2 + $0x20] sm:$0xff] %vm51_vm0, %v378_v0  ;;  %155 = vmatpush.msra.mxu1 %v78_v7  ;;  %210 = vmatpush.msra.mxu2 %v185_v6  ;;  %v76_v12 = vld [vmem:[#allocation6 + $0x20] sm:$0xff]  ;;  %v88_v14 = vld [vmem:[#allocation6 + $0x58] sm:$0xff]  ;;  %v182_v18 = vld [vmem:[#allocation6 + $0x90] sm:$0xff] }
  0x12   :  { %58 = vst.msk [vmem:[#allocation2 + $0x28] sm:$0x3] %vm54_vm1, %v378_v0  ;;  %115 = vmatpush.msra.mxu0 %v90_v8  ;;  %283 = vmatpush.msra.mxu3 %v90_v8  ;;  %v59_v15 = vld [vmem:[#allocation3] sm:$0xff]  ;;  %v75_v16 = vld [vmem:[#allocation6 + $0x18] sm:$0xff]  ;;  %v87_v19 = vld [vmem:[#allocation6 + $0x50] sm:$0xff] }
  0x13   :  { %156 = vmatpush.msra.mxu1 %v77_v9  ;;  %211 = vmatpush.msra.mxu2 %v184_v10  ;;  %64 = vst.msk [vmem:[#allocation2 + $0x1] sm:$0xff] %vm51_vm0, %v59_v15  ;;  %v61_v20 = vld [vmem:[#allocation3 + $0x10] sm:$0xff]  ;;  %v62_v22 = vld [vmem:[#allocation3 + $0x18] sm:$0xff]  ;;  %v181_v23 = vld [vmem:[#allocation6 + $0x88] sm:$0xff] }
  0x14   :  { %116 = vmatpush.msra.mxu0 %v89_v11  ;;  %284 = vmatpush.msra.mxu3 %v89_v11  ;;  %65 = vst.msk [vmem:[#allocation2 + $0x9] sm:$0xff] %vm51_vm0, %v60_v17  ;;  %v74_v21 = vld [vmem:[#allocation6 + $0x10] sm:$0xff]  ;;  %v86_v24 = vld [vmem:[#allocation6 + $0x48] sm:$0xff]  ;;  %v180_v26 = vld [vmem:[#allocation6 + $0x80] sm:$0xff] }
  0x15   :  { %157 = vmatpush.msra.mxu1 %v76_v12  ;;  %212 = vmatpush.msra.mxu2 %v183_v13  ;;  %66 = vst.msk [vmem:[#allocation2 + $0x19] sm:$0xff] %vm51_vm0, %v61_v20  ;;  %v73_v25 = vld [vmem:[#allocation6 + $0x8] sm:$0xff]  ;;  %v85_v27 = vld [vmem:[#allocation6 + $0x40] sm:$0xff]  ;;  %v295_v44 = vld [vmem:[%s443_s2] ss:$0 sm:$0xff]  ;;  %s379_s2 = smov [#allocation8]  }
  0x16   :  { %117 = vmatpush.msra.mxu0 %v88_v14  ;;  %285 = vmatpush.msra.mxu3 %v88_v14  ;;  %67 = vst.msk [vmem:[#allocation2 + $0x21] sm:$0xff] %vm51_vm0, %v62_v22  ;;  %v72_v28 = vld [vmem:[#allocation6] sm:$0xff]  ;;  %s253_s24 = sshll.u32 %s379_s2, 4  ;;  %s254_s24 = int_to_ptr.vmem [resolvable:$true] %s253_s24 }
  0x17   :  { %158 = vmatpush.msra.mxu1 %v75_v16  ;;  %213 = vmatpush.msra.mxu2 %v182_v18 }
  0x18   :  { %118 = vmatpush.msra.mxu0 %v87_v19  ;;  %286 = vmatpush.msra.mxu3 %v87_v19 }
  0x19   :  { %159 = vmatpush.msra.mxu1 %v74_v21  ;;  %214 = vmatpush.msra.mxu2 %v181_v23 }
  0x1a   :  { %119 = vmatpush.msra.mxu0 %v86_v24  ;;  %287 = vmatpush.msra.mxu3 %v86_v24  ;;  %v80_v29 = vld [vmem:[#allocation2 + $0x1] sm:$0xff] }
  0x1b   :  { %160 = vmatpush.msra.mxu1 %v73_v25  ;;  %v68_v30 = vld [vmem:[#allocation2] sm:$0xff]  ;;  %215 = vmatpush.msra.mxu2 %v180_v26  ;;  %v81_v32 = vld [vmem:[#allocation2 + $0x9] sm:$0xff] }
  0x1c   :  { %v175_v31 = vld [vmem:[#allocation2 + $0x2] sm:$0xff]  ;;  %120 = vmatpush.msra.mxu0 %v85_v27  ;;  %288 = vmatpush.msra.mxu3 %v85_v27  ;;  %v176_v33 = vld [vmem:[#allocation2 + $0xa] sm:$0xff]  ;;  %v82_v35 = vld [vmem:[#allocation2 + $0x19] sm:$0xff] }
  0x1d   :  { %277 = vmatmul.msk.f32.vlgmr.msra.gmra.mxu2 %vm51_vm0, %v175_v31  ;;  %161 = vmatpush.msra.mxu1 %v72_v28  ;;  %v69_v34 = vld [vmem:[#allocation2 + $0x8] sm:$0xff]  ;;  %v177_v36 = vld [vmem:[#allocation2 + $0x1a] sm:$0xff] }
  0x1e   :  { %269 = vmatmul.msk.f32.vlgmr.msra.gmra.mxu0 %vm51_vm0, %v80_v29  ;;  %273 = vmatmul.msk.f32.vlgmr.msra.gmra.mxu1 %vm51_vm0, %v68_v30  ;;  %v70_v37 = vld [vmem:[#allocation2 + $0x18] sm:$0xff]  ;;  %v83_v38 = vld [vmem:[#allocation2 + $0x21] sm:$0xff] }
  0x1f   :  { %270 = vmatmul.msk.f32.vlgmr.msra.gmra.mxu3 %vm51_vm0, %v81_v32  ;;  %v178_v39 = vld [vmem:[#allocation2 + $0x22] sm:$0xff] }
  0x20   :  { %v71_v40 = vld [vmem:[#allocation2 + $0x20] sm:$0xff] }
  0x25   :  { %278 = vmatmul.msk.f32.gmra.mxu2 %vm51_vm0, %v176_v33 }
  0x26   :  { %274 = vmatmul.msk.f32.gmra.mxu1 %vm51_vm0, %v69_v34 }
  0x27   :  { %271 = vmatmul.msk.f32.gmra.mxu3 %vm51_vm0, %v82_v35 }
  0x2d   :  { %279 = vmatmul.msk.f32.gmra.mxu2 %vm51_vm0, %v177_v36 }
  0x2e   :  { %275 = vmatmul.msk.f32.gmra.mxu1 %vm51_vm0, %v70_v37 }
  0x2f   :  { %272 = vmatmul.msk.f32.gmra.mxu3 %vm51_vm0, %v83_v38 }
  0x35   :  { %280 = vmatmul.msk.f32.gmra.mxu2 %vm51_vm0, %v178_v39 }
  0x36   :  { %276 = vmatmul.msk.f32.gmra.mxu1 %vm51_vm0, %v71_v40 }
  0x9b   :  { %v122_v41 = vpop.f32.mrf.mxu0  ;;  %v163_v42 = vpop.f32.mrf.mxu1 }
  0x9c   :  { %v164_v43 = vadd.f32 %v163_v42, %v122_v41 }
  0xa0   :  { %v217_v45 = vpop.f32.mrf.mxu2 }
  0xa1   :  { %v229_v46 = vadd.f32 %v217_v45, %v164_v43 }
  0xa2   :  { %v125_v48 = vpop.f32.mrf.mxu3 }
  0xa3   :  { %v237_v47 = vadd.f32 %v295_v44, %v229_v46  ;;  %v166_v49 = vpop.f32.mrf.mxu1 }
  0xa4   :  { %v167_v51 = vadd.f32 %v166_v49, %v125_v48 }
  0xa5   :  { %v241_v50 = vmax.f32 %v237_v47, 0.0 }
  0xa7   :  { %245 = vst [vmem:[#allocation8] sm:$0xff] %v241_v50 }
  0xa8   :  { %v220_v52 = vpop.f32.mrf.mxu2 }
  0xa9   :  { %v230_v53 = vadd.f32 %v220_v52, %v167_v51 }
  0xaa   :  { %v128_v55 = vpop.f32.mrf.mxu3 }
  0xab   :  { %v238_v54 = vadd.f32 %v295_v44, %v230_v53  ;;  %v169_v56 = vpop.f32.mrf.mxu1 }
  0xac   :  { %v170_v58 = vadd.f32 %v169_v56, %v128_v55 }
  0xad   :  { %v242_v57 = vmax.f32 %v238_v54, 0.0 }
  0xaf   :  { %246 = vst [vmem:[#allocation8 + $0x8] sm:$0xff] %v242_v57 }
  0xb0   :  { %v223_v59 = vpop.f32.mrf.mxu2 }
  0xb1   :  { %v231_v60 = vadd.f32 %v223_v59, %v170_v58 }
  0xb2   :  { %v131_v62 = vpop.f32.mrf.mxu3 }
  0xb3   :  { %v239_v61 = vadd.f32 %v295_v44, %v231_v60  ;;  %v172_v63 = vpop.f32.mrf.mxu1 }
  0xb4   :  { %v173_v1 = vadd.f32 %v172_v63, %v131_v62 }
  0xb5   :  { %v243_v0 = vmax.f32 %v239_v61, 0.0 }
  0xb7   :  { %247 = vst [vmem:[#allocation8 + $0x10] sm:$0xff] %v243_v0 }
  0xb8   :  { %v226_v2 = vpop.f32.mrf.mxu2 }
  0xb9   :  { %v232_v3 = vadd.f32 %v226_v2, %v173_v1 }
  0xbb   :  { %v240_v4 = vadd.f32 %v295_v44, %v232_v3 }
  0xbd   :  { %v244_v5 = vmax.f32 %v240_v4, 0.0 }
  0xbf   :  { %248 = vst [vmem:[#allocation8 + $0x18] sm:$0xff] %v244_v5 }
  0xc0   :  { %261 = dma.vmem_to_hbm [thread:$0]  %s254_s24, 512, %s256_s27, [#allocation5], %s375_s20, %s375_s20, %s376_s21  }
  0xc1   :  { %372 = dma.done.wait [#allocation5], 512  }
  0xc2   :  { %373 = vsyncadd [#allocation5], 4294966784 }
  0xc3   :  { %266 = vsyncpa [#allocation4], 1 }
  0xc4   :  { %267 = vsyncpa [#allocation7], 1 }
  0xc5   :  { %268 = vsyncpa [#allocation5], 1 }

</bundles_post_ra>
